<compile_context>
chip_gen: v5e
topology: v5e:2x2
jax: 0.10.0
libtpu: 0.0.40
codegen_flags: <defaults>
</compile_context>

<pallas_src>
import functools

import jax
import jax.numpy as jnp
from jax.experimental import pallas as pl
from jax.experimental.pallas import tpu as pltpu


def _round_up(x, m):
    return (x + m - 1) // m * m


# ----------------------------------------------------------------------------
# Kernel 1: IntraMetapathAggregation (+ per-tile partial sums for inter attn)
# ----------------------------------------------------------------------------
def intra_kernel(edge_ref, node_ref, w_enc_ref, b_enc_ref, a_l_ref, w_r_ref,
                 w1_ref, b1_ref, z_ref, s_ref, *, n_valid, neg_slope):
    # Transposed, lane-dense layout: node axis (tn) / edge-slot*node axis (E*tn)
    # on lanes, feature dims (d_in / KD / H) on sublanes.
    #   edge_ref : (1, 1, d_in, E*tn)  mean-over-L metapath-instance features
    #   node_ref : (d_in, tn)          dst node features (transposed tile)
    #   w_enc_ref: (1, KD, d_in), b_enc_ref: (1, KD, 1)   encoder Linear (transposed)
    #   a_l_ref  : (1, KD, KD)         head-expanded block-diag attn_l (el in KD rows)
    #   w_r_ref  : (1, KD, d_in)       head-expanded attn_r weight (er in KD rows)
    #   w1_ref   : (H, KD), b1_ref: (H, 1)    inter-metapath fc1 (transposed)
    #   z_ref    : (1, KD, tn)         metapath embedding tile (lane-dense store)
    #   s_ref    : (1, 1, H, 1)        per-tile sum of tanh(fc1(z)) over valid nodes
    t = pl.program_id(0)
    tn = node_ref.shape[1]
    en = edge_ref.shape[3]
    E = en // tn

    # Encoder: ONE batched matmul over all E*tn (edge-slot, node) columns.
    h_all = (jnp.dot(w_enc_ref[0], edge_ref[0, 0],
                     preferred_element_type=jnp.float32)
             + b_enc_ref[0])                                              # (KD, E*tn)

    # GAT logits, already head-expanded to KD rows (K vs KD sublanes occupy the
    # same vregs, so the replication is free and no expand matmuls are needed).
    el_all = jnp.dot(a_l_ref[0], h_all,
                     preferred_element_type=jnp.float32)                  # (KD, E*tn)
    er = jnp.dot(w_r_ref[0], node_ref[...],
                 preferred_element_type=jnp.float32)                      # (KD, tn)

    # LeakyReLU + edge softmax over the E slots of each dst node (per head).
    logits = []
    for e in range(E):
        x = el_all[:, e * tn:(e + 1) * tn] + er
        logits.append(jnp.where(x >= 0, x, neg_slope * x))
    mx = logits[0]
    for e in range(1, E):
        mx = jnp.maximum(mx, logits[e])
    ps = [jnp.exp(lg - mx) for lg in logits]
    den = ps[0]
    for e in range(1, E):
        den = den + ps[e]
    inv = 1.0 / den                                                       # (KD, tn)

    # Attention-weighted sum of encoded features, then ELU (overflow-safe exp).
    ft = (ps[0] * inv) * h_all[:, 0:tn]
    for e in range(1, E):
        ft = ft + (ps[e] * inv) * h_all[:, e * tn:(e + 1) * tn]           # (KD, tn)
    ft = jnp.where(ft > 0, ft, jnp.exp(jnp.minimum(ft, 0.0)) - 1.0)       # ELU(alpha=1)
    z_ref[0] = ft

    # Inter-metapath attention, phase 1: per-tile masked column-sum of tanh(fc1(z)).
    s = jnp.tanh(jnp.dot(w1_ref[...], ft, preferred_element_type=jnp.float32)
                 + b1_ref[...])                                           # (H, tn)
    col = jax.lax.broadcasted_iota(jnp.int32, (1, tn), 1) + t * tn
    s = jnp.where(col < n_valid, s, 0.0)                                  # mask pad cols
    s_ref[0, 0] = jnp.sum(s, axis=-1, keepdims=True)                      # (H, 1)


def intra_metapath_pallas(edge_feat, node_t_pad, p, n_valid):
    M, n_tiles, d_in, en = edge_feat.shape
    n_pad = node_t_pad.shape[1]
    tn = n_pad // n_tiles
    KD = p["w_enc"].shape[2]
    H = p["w1"].shape[1]

    # Transposed / head-expanded parameters (tiny one-off JAX ops).
    w_enc_t = jnp.transpose(p["w_enc"], (0, 2, 1))                     # (M, KD, d_in)
    b_enc_t = jnp.transpose(p["b_enc"], (0, 2, 1))                     # (M, KD, 1)
    expand_t = p["expand"].T                                           # (KD, K)
    a_l_exp = jnp.einsum("hk,mjk->mhj", expand_t, p["a_l_mat"])        # (M, KD, KD)
    w_r_exp = jnp.einsum("hk,mdk->mhd", expand_t, p["w_r"])            # (M, KD, d_in)
    w1_t = p["w1"].T                                                   # (H, KD)
    b1_t = p["b1"].T                                                   # (H, 1)

    kernel = functools.partial(intra_kernel, n_valid=n_valid, neg_slope=0.01)
    z, s_part = pl.pallas_call(
        kernel,
        out_shape=(jax.ShapeDtypeStruct((M, KD, n_pad), jnp.float32),
                   jax.ShapeDtypeStruct((M, n_tiles, H, 1), jnp.float32)),
        grid=(n_tiles, M),
        in_specs=[
            pl.BlockSpec((1, 1, d_in, en), lambda t, m: (m, t, 0, 0)),
            pl.BlockSpec((d_in, tn), lambda t, m: (0, t)),
            pl.BlockSpec((1, KD, d_in), lambda t, m: (m, 0, 0)),
            pl.BlockSpec((1, KD, 1), lambda t, m: (m, 0, 0)),
            pl.BlockSpec((1, KD, KD), lambda t, m: (m, 0, 0)),
            pl.BlockSpec((1, KD, d_in), lambda t, m: (m, 0, 0)),
            pl.BlockSpec((H, KD), lambda t, m: (0, 0)),
            pl.BlockSpec((H, 1), lambda t, m: (0, 0)),
        ],
        out_specs=[
            pl.BlockSpec((1, KD, tn), lambda t, m: (m, 0, t)),
            pl.BlockSpec((1, 1, H, 1), lambda t, m: (m, t, 0, 0)),
        ],
        compiler_params=pltpu.CompilerParams(
            dimension_semantics=("parallel", "arbitrary")),
    )(edge_feat, node_t_pad, w_enc_t, b_enc_t, a_l_exp, w_r_exp, w1_t, b1_t)
    return z, s_part


# ----------------------------------------------------------------------------
# Kernel 2: InterMetapathAggregation phase-2 + MAGNNLayer.fc (beta folded into W)
# ----------------------------------------------------------------------------
def inter_kernel(z_ref, wfc_ref, bfc_ref, out_ref):
    # z_ref: (M*KD, tn), wfc_ref: (out_dim, M*KD), bfc_ref: (out_dim, 1)
    out_ref[...] = (jnp.dot(wfc_ref[...], z_ref[...],
                            preferred_element_type=jnp.float32) + bfc_ref[...])


def inter_and_fc_pallas(z_flat, wp_t, bfc_t, tn):
    mkd, n_pad = z_flat.shape
    out_dim = wp_t.shape[0]
    n_tiles = n_pad // tn
    return pl.pallas_call(
        inter_kernel,
        out_shape=jax.ShapeDtypeStruct((out_dim, n_pad), jnp.float32),
        grid=(n_tiles,),
        in_specs=[
            pl.BlockSpec((mkd, tn), lambda t: (0, t)),
            pl.BlockSpec((out_dim, mkd), lambda t: (0, 0)),
            pl.BlockSpec((out_dim, 1), lambda t: (0, 0)),
        ],
        out_specs=pl.BlockSpec((out_dim, tn), lambda t: (0, t)),
        compiler_params=pltpu.CompilerParams(dimension_semantics=("parallel",)),
    )(z_flat, wp_t, bfc_t)


# ----------------------------------------------------------------------------
# Glue: gather with mean-over-L folded in, per-ntype forward (MAGNNLayer.forward)
# ----------------------------------------------------------------------------
def metapath_mean_inst_feat(metapath, node_feats, inst):
    # inst: (N, E, L) int32;  mean over L of node_feats[metapath[l]][inst[:, :, l]]
    L = len(metapath)
    acc = node_feats[metapath[0]][inst[:, :, 0]]
    for l in range(1, L):
        acc = acc + node_feats[metapath[l]][inst[:, :, l]]
    return acc * (1.0 / L)                                             # (N, E, d_in)


def magnn_layer_forward(params, metapaths, node_feats, insts, max_tile_n=512):
    outs = {}
    for ntype, mp_list in metapaths.items():
        node_feat = node_feats[ntype]
        N, d_in = node_feat.shape
        tn = min(max_tile_n, _round_up(N, 8))
        n_pad = _round_up(N, tn)
        n_tiles = n_pad // tn
        M = len(mp_list)

        # Gather + mean over L folded in; pack per-tile (d_in, E*tn) slabs so the
        # big (edge-slot x node) axis sits on lanes and the encoder matmul fills
        # full MXU result lanes; the DMA'd stream is contiguous and unpadded.
        ef_list = []
        for mp, inst in zip(mp_list, insts[ntype]):
            f = metapath_mean_inst_feat(mp, node_feats, inst)          # (N, E, d_in)
            E = f.shape[1]
            f = jnp.pad(f, ((0, n_pad - N), (0, 0), (0, 0)))
            f = f.reshape(n_tiles, tn, E, d_in)
            f = jnp.transpose(f, (0, 3, 2, 1))                         # (n_tiles, d_in, E, tn)
            ef_list.append(f.reshape(n_tiles, d_in, E * tn))
        edge_feat = jnp.stack(ef_list, axis=0)                         # (M, n_tiles, d_in, E*tn)
        node_t_pad = jnp.pad(node_feat, ((0, n_pad - N), (0, 0))).T    # (d_in, n_pad)

        p = params[ntype]
        z, s_part = intra_metapath_pallas(edge_feat, node_t_pad, p, N)
        KD = z.shape[1]                                                # z: (M, KD, n_pad)

        # Inter phase 1 (tiny M-length reduction, plain JAX): metapath weights.
        s_mean = jnp.sum(s_part[..., 0], axis=1) / float(N)            # (M, H)
        e = jnp.sum(s_mean * p["w2"], axis=-1)                         # (M,)
        beta = jax.nn.softmax(e)                                       # (M,)

        # Fold beta into the final Linear: kernel 2 is one matmul per tile.
        fc_w, fc_b = params["fc_w"], params["fc_b"]
        out_dim = fc_w.shape[1]
        wp_t = (beta[:, None, None] * fc_w[None]).reshape(M * KD, out_dim).T
        bfc_t = fc_b.T                                                 # (out_dim, 1)
        z_flat = z.reshape(M * KD, n_pad)

        out_t = inter_and_fc_pallas(z_flat, wp_t, bfc_t, tn)           # (out_dim, n_pad)
        outs[ntype] = out_t.T[:N]
    return outs


# ----------------------------------------------------------------------------
# Pure-JAX reference (numerical sanity check)
# ----------------------------------------------------------------------------
def ref_forward_ntype(params, metapaths, node_feats, insts, ntype):
    p = params[ntype]
    nf = node_feats[ntype]
    zs = []
    for m, (mp, inst) in enumerate(zip(metapaths[ntype], insts[ntype])):
        mean_f = metapath_mean_inst_feat(mp, node_feats, inst)         # (N, E, d_in)
        h = jnp.einsum("ned,dk->nek", mean_f, p["w_enc"][m]) + p["b_enc"][m]
        el = jnp.einsum("nek,kh->neh", h, p["a_l_mat"][m])             # (N, E, K)
        er = nf @ p["w_r"][m]                                          # (N, K)
        x = el + er[:, None, :]
        x = jnp.where(x >= 0, x, 0.01 * x)
        a = jax.nn.softmax(x, axis=1)
        ft = jnp.sum(jnp.einsum("neh,hk->nek", a, p["expand"]) * h, axis=1)
        ft = jnp.where(ft > 0, ft, jnp.exp(ft) - 1.0)
        zs.append(ft)
    z = jnp.stack(zs, axis=1)                                          # (N, M, KD)
    s = jnp.tanh(jnp.einsum("nmk,kh->nmh", z, p["w1"]) + p["b1"]).mean(axis=0)
    e = jnp.sum(s * p["w2"], axis=-1)
    beta = jax.nn.softmax(e)
    agg = jnp.einsum("m,nmk->nk", beta, z)
    return agg @ params["fc_w"] + params["fc_b"]


# ----------------------------------------------------------------------------
# Deterministic parameter / input construction
# ----------------------------------------------------------------------------
def make_params(key, metapaths, d_in, d_out, num_heads, attn_hidden):
    KD = num_heads * d_out
    params = {}
    key, kfc_w, kfc_b = jax.random.split(key, 3)
    params["fc_w"] = 0.2 * jax.random.normal(kfc_w, (KD, d_out), jnp.float32)
    params["fc_b"] = 0.1 * jax.random.normal(kfc_b, (1, d_out), jnp.float32)

    expand = jnp.repeat(jnp.eye(num_heads, dtype=jnp.float32), d_out, axis=1)  # (K, KD)

    for ntype, mp_list in metapaths.items():
        M = len(mp_list)
        key, k1, k2, k3, k4, k5, k6, k7 = jax.random.split(key, 8)
        w_enc = 0.2 * jax.random.normal(k1, (M, d_in, KD), jnp.float32)
        b_enc = 0.1 * jax.random.normal(k2, (M, 1, KD), jnp.float32)
        attn_l = 0.2 * jax.random.normal(k3, (M, num_heads, d_out), jnp.float32)
        # block-diag: a_l_mat[m, k*d_out + d, k'] = attn_l[m, k, d] * (k == k')
        a_l_mat = (attn_l[:, :, :, None]
                   * jnp.eye(num_heads, dtype=jnp.float32)[None, :, None, :]
                   ).reshape(M, KD, num_heads)
        w_r = 0.2 * jax.random.normal(k4, (M, d_in, num_heads), jnp.float32)
        w1 = 0.2 * jax.random.normal(k5, (KD, attn_hidden), jnp.float32)
        b1 = 0.1 * jax.random.normal(k6, (1, attn_hidden), jnp.float32)
        w2 = 0.2 * jax.random.normal(k7, (1, attn_hidden), jnp.float32)
        params[ntype] = dict(w_enc=w_enc, b_enc=b_enc, a_l_mat=a_l_mat, w_r=w_r,
                             expand=expand, w1=w1, b1=b1, w2=w2)
    return params


if __name__ == "__main__":
    d_in, d_out, num_heads = 8, 4, 2
    attn_hidden = 128          # MAGNNLayerNtypeSpecific default
    E, L = 4, 3                # fixed in-degree per dst node, metapath length
    n_nodes = {"a": 16, "b": 12, "c": 10}
    metapaths = {
        "a": [["a", "b", "a"], ["a", "c", "a"]],
        "b": [["b", "a", "b"], ["b", "c", "b"]],
    }

    key = jax.random.PRNGKey(0)
    key, *fkeys = jax.random.split(key, 1 + len(n_nodes))
    node_feats = {t: jax.random.normal(k, (n, d_in), jnp.float32)
                  for (t, n), k in zip(n_nodes.items(), fkeys)}

    # metapath instance indices: inst[n, e, l] indexes nodes of type metapath[l];
    # position 0 is the destination node itself.
    insts = {}
    for ntype, mp_list in metapaths.items():
        N = n_nodes[ntype]
        insts[ntype] = []
        for mp in mp_list:
            cols = []
            for l, t in enumerate(mp):
                key, kk = jax.random.split(key)
                cols.append(jax.random.randint(kk, (N, E), 0, n_nodes[t]))
            inst = jnp.stack(cols, axis=-1).astype(jnp.int32)          # (N, E, L)
            inst = inst.at[:, :, 0].set(jnp.arange(N, dtype=jnp.int32)[:, None])
            insts[ntype].append(inst)

    params = make_params(jax.random.PRNGKey(0), metapaths, d_in, d_out,
                         num_heads, attn_hidden)

    outs = magnn_layer_forward(params, metapaths, node_feats, insts)
    for ntype in metapaths:
        jax.block_until_ready(outs[ntype])
        assert outs[ntype].shape == (n_nodes[ntype], d_out)
        ref = ref_forward_ntype(params, metapaths, node_feats, insts, ntype)
        assert jnp.allclose(outs[ntype], ref, rtol=2e-2, atol=2e-2), ntype
    print("KERNEL_OK")
</pallas_src>

<mosaic_0001>
module attributes {stable_mosaic.version = 11 : i64} {
  func.func @intra_kernel(%arg0: i32, %arg1: i32, %arg2: memref<1x1x8x64xf32, #tpu.memory_space<vmem>>, %arg3: memref<8x16xf32, #tpu.memory_space<vmem>>, %arg4: memref<1x8x8xf32, #tpu.memory_space<vmem>>, %arg5: memref<1x8x1xf32, #tpu.memory_space<vmem>>, %arg6: memref<1x8x8xf32, #tpu.memory_space<vmem>>, %arg7: memref<1x8x8xf32, #tpu.memory_space<vmem>>, %arg8: memref<128x8xf32, #tpu.memory_space<vmem>>, %arg9: memref<128x1xf32, #tpu.memory_space<vmem>>, %arg10: memref<1x8x16xf32, #tpu.memory_space<vmem>>, %arg11: memref<1x1x128x1xf32, #tpu.memory_space<vmem>>) attributes {dimension_semantics = [#tpu.dimension_semantics<parallel>, #tpu.dimension_semantics<arbitrary>], iteration_bounds = array<i64: 1, 2>, scalar_prefetch = 0 : i64, scratch_operands = 0 : i64, tpu.core_type = #tpu.core_type<tc>, window_params = [{transform_indices = @transform_0, window_bounds = array<i64: 1, 1, 8, 64>}, {transform_indices = @transform_1, window_bounds = array<i64: 8, 16>}, {transform_indices = @transform_2, window_bounds = array<i64: 1, 8, 8>}, {transform_indices = @transform_3, window_bounds = array<i64: 1, 8, 1>}, {transform_indices = @transform_4, window_bounds = array<i64: 1, 8, 8>}, {transform_indices = @transform_5, window_bounds = array<i64: 1, 8, 8>}, {pipeline_mode = #tpu.pipeline_mode<synchronous>, transform_indices = @transform_6, window_bounds = array<i64: 128, 8>}, {pipeline_mode = #tpu.pipeline_mode<synchronous>, transform_indices = @transform_7, window_bounds = array<i64: 128, 1>}, {transform_indices = @transform_8, window_bounds = array<i64: 1, 8, 16>}, {transform_indices = @transform_9, window_bounds = array<i64: 1, 1, 128, 1>}]} {
    %c0 = arith.constant 0 : index
    %c0_0 = arith.constant 0 : index
    %c0_1 = arith.constant 0 : index
    %0 = vector.load %arg4[%c0, %c0_0, %c0_1] : memref<1x8x8xf32, #tpu.memory_space<vmem>>, vector<1x8x8xf32>
    %1 = vector.shape_cast %0 : vector<1x8x8xf32> to vector<8x8xf32>
    %c0_2 = arith.constant 0 : index
    %c0_3 = arith.constant 0 : index
    %c0_4 = arith.constant 0 : index
    %c0_5 = arith.constant 0 : index
    %2 = vector.load %arg2[%c0_2, %c0_3, %c0_4, %c0_5] : memref<1x1x8x64xf32, #tpu.memory_space<vmem>>, vector<1x1x8x64xf32>
    %3 = vector.shape_cast %2 : vector<1x1x8x64xf32> to vector<8x64xf32>
    %cst = arith.constant dense<0.000000e+00> : vector<8x64xf32>
    %4 = tpu.matmul %1, %3, %cst {dimension_numbers = #tpu.dot_dimension_numbers<[1], [0], [0], [1], [0, 0, 1, 1], [], []>} : vector<8x8xf32>, vector<8x64xf32>, vector<8x64xf32> -> vector<8x64xf32>
    %c0_6 = arith.constant 0 : index
    %c0_7 = arith.constant 0 : index
    %c0_8 = arith.constant 0 : index
    %5 = vector.load %arg5[%c0_6, %c0_7, %c0_8] : memref<1x8x1xf32, #tpu.memory_space<vmem>>, vector<1x8x1xf32>
    %6 = vector.shape_cast %5 : vector<1x8x1xf32> to vector<8x1xf32>
    %7 = vector.broadcast %6 : vector<8x1xf32> to vector<8x64xf32>
    %8 = arith.addf %4, %7 : vector<8x64xf32>
    %c0_9 = arith.constant 0 : index
    %c0_10 = arith.constant 0 : index
    %c0_11 = arith.constant 0 : index
    %9 = vector.load %arg6[%c0_9, %c0_10, %c0_11] : memref<1x8x8xf32, #tpu.memory_space<vmem>>, vector<1x8x8xf32>
    %10 = vector.shape_cast %9 : vector<1x8x8xf32> to vector<8x8xf32>
    %cst_12 = arith.constant dense<0.000000e+00> : vector<8x64xf32>
    %11 = tpu.matmul %10, %8, %cst_12 {dimension_numbers = #tpu.dot_dimension_numbers<[1], [0], [0], [1], [0, 0, 1, 1], [], []>} : vector<8x8xf32>, vector<8x64xf32>, vector<8x64xf32> -> vector<8x64xf32>
    %c0_13 = arith.constant 0 : index
    %c0_14 = arith.constant 0 : index
    %c0_15 = arith.constant 0 : index
    %12 = vector.load %arg7[%c0_13, %c0_14, %c0_15] : memref<1x8x8xf32, #tpu.memory_space<vmem>>, vector<1x8x8xf32>
    %13 = vector.shape_cast %12 : vector<1x8x8xf32> to vector<8x8xf32>
    %c0_16 = arith.constant 0 : index
    %c0_17 = arith.constant 0 : index
    %14 = vector.load %arg3[%c0_16, %c0_17] : memref<8x16xf32, #tpu.memory_space<vmem>>, vector<8x16xf32>
    %cst_18 = arith.constant dense<0.000000e+00> : vector<8x16xf32>
    %15 = tpu.matmul %13, %14, %cst_18 {dimension_numbers = #tpu.dot_dimension_numbers<[1], [0], [0], [1], [0, 0, 1, 1], [], []>} : vector<8x8xf32>, vector<8x16xf32>, vector<8x16xf32> -> vector<8x16xf32>
    %16 = vector.extract_strided_slice %11 {offsets = [0, 0], sizes = [8, 16], strides = [1, 1]} : vector<8x64xf32> to vector<8x16xf32>
    %17 = arith.addf %16, %15 : vector<8x16xf32>
    %cst_19 = arith.constant 0.000000e+00 : f32
    %18 = vector.broadcast %cst_19 : f32 to vector<8x16xf32>
    %19 = arith.cmpf oge, %17, %18 : vector<8x16xf32>
    %cst_20 = arith.constant 0.00999999977 : f32
    %20 = vector.broadcast %cst_20 : f32 to vector<8x16xf32>
    %21 = arith.mulf %20, %17 : vector<8x16xf32>
    %22 = arith.select %19, %17, %21 : vector<8x16xi1>, vector<8x16xf32>
    %23 = vector.extract_strided_slice %11 {offsets = [0, 16], sizes = [8, 16], strides = [1, 1]} : vector<8x64xf32> to vector<8x16xf32>
    %24 = arith.addf %23, %15 : vector<8x16xf32>
    %cst_21 = arith.constant 0.000000e+00 : f32
    %25 = vector.broadcast %cst_21 : f32 to vector<8x16xf32>
    %26 = arith.cmpf oge, %24, %25 : vector<8x16xf32>
    %cst_22 = arith.constant 0.00999999977 : f32
    %27 = vector.broadcast %cst_22 : f32 to vector<8x16xf32>
    %28 = arith.mulf %27, %24 : vector<8x16xf32>
    %29 = arith.select %26, %24, %28 : vector<8x16xi1>, vector<8x16xf32>
    %30 = vector.extract_strided_slice %11 {offsets = [0, 32], sizes = [8, 16], strides = [1, 1]} : vector<8x64xf32> to vector<8x16xf32>
    %31 = arith.addf %30, %15 : vector<8x16xf32>
    %cst_23 = arith.constant 0.000000e+00 : f32
    %32 = vector.broadcast %cst_23 : f32 to vector<8x16xf32>
    %33 = arith.cmpf oge, %31, %32 : vector<8x16xf32>
    %cst_24 = arith.constant 0.00999999977 : f32
    %34 = vector.broadcast %cst_24 : f32 to vector<8x16xf32>
    %35 = arith.mulf %34, %31 : vector<8x16xf32>
    %36 = arith.select %33, %31, %35 : vector<8x16xi1>, vector<8x16xf32>
    %37 = vector.extract_strided_slice %11 {offsets = [0, 48], sizes = [8, 16], strides = [1, 1]} : vector<8x64xf32> to vector<8x16xf32>
    %38 = arith.addf %37, %15 : vector<8x16xf32>
    %cst_25 = arith.constant 0.000000e+00 : f32
    %39 = vector.broadcast %cst_25 : f32 to vector<8x16xf32>
    %40 = arith.cmpf oge, %38, %39 : vector<8x16xf32>
    %cst_26 = arith.constant 0.00999999977 : f32
    %41 = vector.broadcast %cst_26 : f32 to vector<8x16xf32>
    %42 = arith.mulf %41, %38 : vector<8x16xf32>
    %43 = arith.select %40, %38, %42 : vector<8x16xi1>, vector<8x16xf32>
    %44 = arith.maximumf %22, %29 : vector<8x16xf32>
    %45 = arith.maximumf %44, %36 : vector<8x16xf32>
    %46 = arith.maximumf %45, %43 : vector<8x16xf32>
    %47 = arith.subf %22, %46 : vector<8x16xf32>
    %48 = math.exp %47 : vector<8x16xf32>
    %49 = arith.subf %29, %46 : vector<8x16xf32>
    %50 = math.exp %49 : vector<8x16xf32>
    %51 = arith.subf %36, %46 : vector<8x16xf32>
    %52 = math.exp %51 : vector<8x16xf32>
    %53 = arith.subf %43, %46 : vector<8x16xf32>
    %54 = math.exp %53 : vector<8x16xf32>
    %55 = arith.addf %48, %50 : vector<8x16xf32>
    %56 = arith.addf %55, %52 : vector<8x16xf32>
    %57 = arith.addf %56, %54 : vector<8x16xf32>
    %cst_27 = arith.constant 1.000000e+00 : f32
    %58 = vector.broadcast %cst_27 : f32 to vector<8x16xf32>
    %59 = arith.divf %58, %57 : vector<8x16xf32>
    %60 = arith.mulf %48, %59 : vector<8x16xf32>
    %61 = vector.extract_strided_slice %8 {offsets = [0, 0], sizes = [8, 16], strides = [1, 1]} : vector<8x64xf32> to vector<8x16xf32>
    %62 = arith.mulf %60, %61 : vector<8x16xf32>
    %63 = arith.mulf %50, %59 : vector<8x16xf32>
    %64 = vector.extract_strided_slice %8 {offsets = [0, 16], sizes = [8, 16], strides = [1, 1]} : vector<8x64xf32> to vector<8x16xf32>
    %65 = arith.mulf %63, %64 : vector<8x16xf32>
    %66 = arith.addf %62, %65 : vector<8x16xf32>
    %67 = arith.mulf %52, %59 : vector<8x16xf32>
    %68 = vector.extract_strided_slice %8 {offsets = [0, 32], sizes = [8, 16], strides = [1, 1]} : vector<8x64xf32> to vector<8x16xf32>
    %69 = arith.mulf %67, %68 : vector<8x16xf32>
    %70 = arith.addf %66, %69 : vector<8x16xf32>
    %71 = arith.mulf %54, %59 : vector<8x16xf32>
    %72 = vector.extract_strided_slice %8 {offsets = [0, 48], sizes = [8, 16], strides = [1, 1]} : vector<8x64xf32> to vector<8x16xf32>
    %73 = arith.mulf %71, %72 : vector<8x16xf32>
    %74 = arith.addf %70, %73 : vector<8x16xf32>
    %cst_28 = arith.constant 0.000000e+00 : f32
    %75 = vector.broadcast %cst_28 : f32 to vector<8x16xf32>
    %76 = arith.cmpf ogt, %74, %75 : vector<8x16xf32>
    %cst_29 = arith.constant 0.000000e+00 : f32
    %77 = vector.broadcast %cst_29 : f32 to vector<8x16xf32>
    %78 = arith.minimumf %74, %77 : vector<8x16xf32>
    %79 = math.exp %78 : vector<8x16xf32>
    %cst_30 = arith.constant 1.000000e+00 : f32
    %80 = vector.broadcast %cst_30 : f32 to vector<8x16xf32>
    %81 = arith.subf %79, %80 : vector<8x16xf32>
    %82 = arith.select %76, %74, %81 : vector<8x16xi1>, vector<8x16xf32>
    %c0_31 = arith.constant 0 : index
    %c0_32 = arith.constant 0 : index
    %c0_33 = arith.constant 0 : index
    %83 = vector.load %arg10[%c0_31, %c0_32, %c0_33] : memref<1x8x16xf32, #tpu.memory_space<vmem>>, vector<1x8x16xf32>
    %84 = vector.shape_cast %83 : vector<1x8x16xf32> to vector<8x16xf32>
    %85 = vector.shape_cast %82 : vector<8x16xf32> to vector<1x8x16xf32>
    tpu.vector_store %arg10[%c0_31, %c0_32, %c0_33], %85 {strides = array<i32>} : memref<1x8x16xf32, #tpu.memory_space<vmem>>, vector<1x8x16xf32>,
    %c0_34 = arith.constant 0 : index
    %c0_35 = arith.constant 0 : index
    %86 = vector.load %arg8[%c0_34, %c0_35] : memref<128x8xf32, #tpu.memory_space<vmem>>, vector<128x8xf32>
    %cst_36 = arith.constant dense<0.000000e+00> : vector<128x16xf32>
    %87 = tpu.matmul %86, %82, %cst_36 {dimension_numbers = #tpu.dot_dimension_numbers<[1], [0], [0], [1], [0, 0, 1, 1], [], []>} : vector<128x8xf32>, vector<8x16xf32>, vector<128x16xf32> -> vector<128x16xf32>
    %c0_37 = arith.constant 0 : index
    %c0_38 = arith.constant 0 : index
    %88 = vector.load %arg9[%c0_37, %c0_38] : memref<128x1xf32, #tpu.memory_space<vmem>>, vector<128x1xf32>
    %89 = vector.broadcast %88 : vector<128x1xf32> to vector<128x16xf32>
    %90 = arith.addf %87, %89 : vector<128x16xf32>
    %91 = math.tanh %90 : vector<128x16xf32>
    %92 = tpu.iota {dimensions = array<i32: 1>} : vector<1x16xi32>
    %c16_i32 = arith.constant 16 : i32
    %93 = arith.muli %arg0, %c16_i32 : i32
    %94 = vector.broadcast %93 : i32 to vector<1x16xi32>
    %95 = arith.addi %92, %94 : vector<1x16xi32>
    %c16_i32_39 = arith.constant 16 : i32
    %96 = vector.broadcast %c16_i32_39 : i32 to vector<1x16xi32>
    %97 = arith.cmpi slt, %95, %96 : vector<1x16xi32>
    %cst_40 = arith.constant 0.000000e+00 : f32
    %98 = vector.shape_cast %97 : vector<1x16xi1> to vector<1x16xi1>
    %99 = vector.broadcast %98 : vector<1x16xi1> to vector<128x16xi1>
    %100 = vector.broadcast %cst_40 : f32 to vector<128x16xf32>
    %101 = arith.select %99, %91, %100 : vector<128x16xi1>, vector<128x16xf32>
    %cst_41 = arith.constant dense<0.000000e+00> : vector<128xf32>
    %102 = vector.multi_reduction <add>, %101, %cst_41 [1] : vector<128x16xf32> to vector<128xf32>
    %103 = vector.shape_cast %102 : vector<128xf32> to vector<128x1xf32>
    %c0_42 = arith.constant 0 : index
    %c0_43 = arith.constant 0 : index
    %c0_44 = arith.constant 0 : index
    %c0_45 = arith.constant 0 : index
    %104 = vector.load %arg11[%c0_42, %c0_43, %c0_44, %c0_45] : memref<1x1x128x1xf32, #tpu.memory_space<vmem>>, vector<1x1x128x1xf32>
    %105 = vector.shape_cast %104 : vector<1x1x128x1xf32> to vector<128x1xf32>
    %106 = vector.shape_cast %103 : vector<128x1xf32> to vector<1x1x128x1xf32>
    tpu.vector_store %arg11[%c0_42, %c0_43, %c0_44, %c0_45], %106 {strides = array<i32>} : memref<1x1x128x1xf32, #tpu.memory_space<vmem>>, vector<1x1x128x1xf32>,
    return
  }
  func.func @transform_0(%arg0: i32, %arg1: i32) -> (i32, i32, i32, i32) {
    %c0_i32 = arith.constant 0 : i32
    %c0_i32_0 = arith.constant 0 : i32
    %c0_i32_1 = arith.constant 0 : i32
    return %arg1, %arg0, %c0_i32, %c0_i32_0 : i32, i32, i32, i32
  }
  func.func @transform_1(%arg0: i32, %arg1: i32) -> (i32, i32) {
    %c0_i32 = arith.constant 0 : i32
    %c0_i32_0 = arith.constant 0 : i32
    return %c0_i32, %arg0 : i32, i32
  }
  func.func @transform_2(%arg0: i32, %arg1: i32) -> (i32, i32, i32) {
    %c0_i32 = arith.constant 0 : i32
    %c0_i32_0 = arith.constant 0 : i32
    %c0_i32_1 = arith.constant 0 : i32
    return %arg1, %c0_i32, %c0_i32_0 : i32, i32, i32
  }
  func.func @transform_3(%arg0: i32, %arg1: i32) -> (i32, i32, i32) {
    %c0_i32 = arith.constant 0 : i32
    %c0_i32_0 = arith.constant 0 : i32
    %c0_i32_1 = arith.constant 0 : i32
    return %arg1, %c0_i32, %c0_i32_0 : i32, i32, i32
  }
  func.func @transform_4(%arg0: i32, %arg1: i32) -> (i32, i32, i32) {
    %c0_i32 = arith.constant 0 : i32
    %c0_i32_0 = arith.constant 0 : i32
    %c0_i32_1 = arith.constant 0 : i32
    return %arg1, %c0_i32, %c0_i32_0 : i32, i32, i32
  }
  func.func @transform_5(%arg0: i32, %arg1: i32) -> (i32, i32, i32) {
    %c0_i32 = arith.constant 0 : i32
    %c0_i32_0 = arith.constant 0 : i32
    %c0_i32_1 = arith.constant 0 : i32
    return %arg1, %c0_i32, %c0_i32_0 : i32, i32, i32
  }
  func.func @transform_6(%arg0: i32, %arg1: i32) -> (i32, i32) {
    %c0_i32 = arith.constant 0 : i32
    %c0_i32_0 = arith.constant 0 : i32
    %c0_i32_1 = arith.constant 0 : i32
    return %c0_i32, %c0_i32_0 : i32, i32
  }
  func.func @transform_7(%arg0: i32, %arg1: i32) -> (i32, i32) {
    %c0_i32 = arith.constant 0 : i32
    %c0_i32_0 = arith.constant 0 : i32
    %c0_i32_1 = arith.constant 0 : i32
    return %c0_i32, %c0_i32_0 : i32, i32
  }
  func.func @transform_8(%arg0: i32, %arg1: i32) -> (i32, i32, i32) {
    %c0_i32 = arith.constant 0 : i32
    %c0_i32_0 = arith.constant 0 : i32
    return %arg1, %c0_i32, %arg0 : i32, i32, i32
  }
  func.func @transform_9(%arg0: i32, %arg1: i32) -> (i32, i32, i32, i32) {
    %c0_i32 = arith.constant 0 : i32
    %c0_i32_0 = arith.constant 0 : i32
    %c0_i32_1 = arith.constant 0 : i32
    return %arg1, %arg0, %c0_i32, %c0_i32_0 : i32, i32, i32, i32
  }
}

</mosaic_0001>

<bundles_post_ra>
// kernel: tpu_custom_call.1
= control target key start
LH: loop header
LB: loop body
LE: loop exit
PB: predicated region body
PF: predicated region fallthrough
CT: control target
= control target key end

     0   :  { %s1860_s0 = inlined_call_operand.vmem [shape: f32[2,1,8,64], index: 0, kind: input, shape index: {}]   ;;  %s1861_s1 = inlined_call_operand.vmem [shape: f32[8,16], index: 1, kind: input, shape index: {}]   ;;  %s1862_s2 = inlined_call_operand.vmem [shape: f32[2,8,8], index: 2, kind: input, shape index: {}]   ;;  %s1863_s3 = inlined_call_operand.vmem [shape: f32[2,8,1], index: 3, kind: input, shape index: {}]   ;;  %s1864_s4 = inlined_call_operand.vmem [shape: f32[2,8,8], index: 4, kind: input, shape index: {}]   ;;  %s1865_s5 = inlined_call_operand.vmem [shape: f32[2,8,8], index: 5, kind: input, shape index: {}]   ;;  %s1866_s6 = inlined_call_operand.vmem [shape: f32[128,8], index: 6, kind: input, shape index: {}]   ;;  %s1867_s7 = inlined_call_operand.vmem [shape: f32[128,1], index: 7, kind: input, shape index: {}]   ;;  %s1868_s8 = inlined_call_operand.hbm [shape: f32[2,8,16], index: 8, kind: output, shape index: {0}]   ;;  %s1869_s9 = inlined_call_operand.vmem [shape: f32[2,1,128,1], index: 9, kind: output, shape index: {1}]  }
   0x1   :  { %1872 = sst [smem:[#allocation7_spill]] %s1861_s1 }
   0x2   :  { %15 = vsyncpa [#allocation3], 0 }
   0x3   :  { %17 = vsyncpa [#allocation3 + $0x1], 0  ;;  %s1498_s30 = smov 0   ;;  %s1500_s10 = smov 0  }
   0x4   :  { %s1502_s11 = smov 0   ;;  %s1504_s12 = smov 0  }
   0x5   :  { %s1506_s13 = smov 0   ;;  %s1508_s14 = smov 0  }
   0x6 LB: > { %1873 = sst [smem:[#allocation5_spill]] %s1435_s13  ;;  %s1210_s15 = sadd.s32 4294967295, %s1439_s14   ;;  %s1439_s14 = sphi %s1508_s14, %s23_s14   ;;  %s1435_s13 = sphi %s1506_s13, %s1879_s13   ;;  %s1431_s12 = sphi %s1504_s12, %s1878_s12   ;;  %s1427_s11 = sphi %s1502_s11, %s1882_s11   ;;  %s1423_s10 = sphi %s1500_s10, %s1881_s10   ;;  %s1419_s30 = sphi %s1498_s30, %s1880_s30  }
   0x7   : > { %s1211_s16 = sadd.s32 4294967294, %s1439_s14   ;;  %s32_s17 = sadd.s32 1, %s1435_s13 }
   0x8   : > { %s244_s18 = sadd.s32 1, %s1427_s11  ;;  %p33_p0 = scmp.ge.s32.totalorder %s32_s17, 2 }
   0x9   : > { %p254_p1 = scmp.ne.s32.totalorder %s1427_s11, %s1423_s10  ;;  %p255_p2 = scmp.eq.s32.totalorder %s1210_s15, 1 }
   0xa   : > { %p260_p3 = scmp.ne.s32.totalorder %s1423_s10, %s1419_s30  ;;  %s1884_s17 = smov (%p33_p0, %s32_s17), 0 }
   0xb   : > { %1874 = sst [smem:[#allocation6_spill]] %s1884_s17  ;;  %p1538_p4 = por %p255_p2, %p254_p1 }
   0xc   : > { %p261_p5 = scmp.eq.s32.totalorder %s1211_s16, 1  ;;  %s239_s20 = ssub.s32 %s1435_s13, %s1884_s17 }
   0xd   : > { %p1215_p6 = scmp.ge.s32.totalorder %s1439_s14, 1  ;;  %p242_p7 = scmp.eq.s32.totalorder %s239_s20, 0 }
   0xe   : > { %p1545_p8 = por %p261_p5, %p260_p3  ;;  %p358_p9 = scmp.lt.s32.totalorder %s1439_s14, 3 }
   0xf   : > { %s1551_s22 = scalar_select %p242_p7, %s1427_s11, %s244_s18  }
  0x10   : > { %p359_p10 = pnand %p1215_p6, %p358_p9 }
  0x11   : > { %s1877_s1 = sld [smem:[#allocation7_spill]] (!%p359_p10)  ;;  %p425_p11 = scmp.lt.s32.totalorder (!%p359_p10), %s1431_s12, 1 }
  0x12   : > { %362 = sbr.rel (%p359_p10) target bundleno = 1231 (0x4cf), region = 52  ;;  %s1443_s17 = smov (!%p359_p10), 16  }
  0x13   : > { %s1446_s15 = smov (!%p359_p10), 112   ;;  %s1447_s16 = smov (!%p359_p10), 96  }
  0x14   : > { %s411_s23 = sand.u32 (!%p359_p10), 1, %s1423_s10  }
  0x17   : > { %v518_v0 = vld [vmem:[%s1877_s1] sm:$0xff]  ;;  %v1441_v1 = vmov 0   ;;  %s1558_s25 = scalar_select %p425_p11, %s1431_s12, 1  ;;  %vm469_vm0 = vcmask 64512   ;;  %vm674_vm9 = vcmask 130048  }
  0x18   : > { %537 = vmatpush.msra.mxu2 %v518_v0  ;;  %1314 = vset.pattern.permute.xlu0 %v1441_v1  ;;  %s1442_s1 = smov 32  }
  0x19   : > { %1315 = vset.pattern.permute.xlu1 %v1441_v1  ;;  %1316 = vset.pattern.permute.xlu2 %v1441_v1  ;;  %s1217_s26 = sshll.u32 %s1558_s25, 3 }
  0x1a   : > { %s431_s29 = scalar_lea.vmem %s1860_s0, %s1217_s26  ;;  %s451_s18 = scalar_lea.vmem %s1865_s5, %s1217_s26 }
  0x1b   : > { %v462_v2 = vld [vmem:[%s431_s29] sm:$0xff]  ;;  %s439_s24 = scalar_lea.vmem %s1862_s2, %s1217_s26  ;;  %s443_s13 = scalar_lea.vmem %s1863_s3, %s1217_s26 }
  0x1c   : > { %488 = vmatpush.msra.mxu0 %v462_v2  ;;  %v517_v3 = vld [vmem:[%s451_s18] sm:$0xff]  ;;  %s447_s29 = scalar_lea.vmem %s1864_s4, %s1217_s26  ;;  %s1445_s26 = smov 80  }
  0x1d   : > { %v461_v4 = vld [vmem:[%s439_s24] sm:$0xff]  ;;  %1226 = vmatmul.msk.f32.vlgmr.msra.gmra.mxu2 %vm469_vm0, %v517_v3  ;;  %s1649_s24 = sshll.u32 %s411_s23, 3 }
  0x1e   : > { %1224 = vmatmul.msk.f32.vlgmr.msra.gmra.mxu0 %vm469_vm0, %v461_v4  ;;  %v463_v5 = vld [vmem:[%s443_s13] sm:$0xff]  ;;  %s1444_s13 = smov 48   ;;  %s413_s20 = scalar_lea.vmem [#allocation2], %s1649_s24 }
  0x1f   : > { %466 = vperm.xlu0 %1314, %v463_v5   ;;  %v493_v9 = vld [vmem:[%s447_s29] sm:$0xff]  ;;  %s1029_s27 = sshll.u32 %s413_s20, 4  ;;  %s1030_s27 = int_to_ptr.vmem [resolvable:$true] %s1029_s27 }
  0x91   : > { %v467_v6 = vpop.permute.xlu0 %466 }
  0x9b   : > { %v490_v7 = vpop.f32.mrf.mxu0 }
  0x9c   : > { %v1578_v8 = vadd.f32 %v490_v7, %v467_v6 }
  0x9e   : > { %512 = vmatpush.msra.mxu1 %v1578_v8 }
  0x9f   : > { %1225 = vmatmul.msk.f32.vlgmr.msra.gmra.mxu1 %vm469_vm0, %v493_v9 }
  0xa0   : > { %v539_v10 = vpop.f32.mrf.mxu2 }
  0xa1   : > { %554 = vrot.lane.b32.xlu1 %v539_v10, %s1442_s1  ;;  %547 = vrot.lane.b32.xlu0 %v539_v10, %s1443_s17 }
  0xa9   : > { %561 = vrot.lane.b32.xlu1 %v539_v10, %s1444_s13 }
 0x113   : > { %v555_v11 = vpop.permute.xlu1 %554  ;;  %v548_v12 = vpop.permute.xlu0 %547 }
 0x11b   : > { %v562_v13 = vpop.permute.xlu1 %561 }
 0x11c   : > { %v514_v14 = vpop.f32.mrf.mxu1 }
 0x11d   : > { %v564_v15 = vadd.f32 %v562_v13, %v514_v14  ;;  %v550_v16 = vadd.f32 %v548_v12, %v514_v14  ;;  %v557_v19 = vadd.f32 %v555_v11, %v514_v14  ;;  %v542_v25 = vadd.f32 %v539_v10, %v514_v14  ;;  %v694_v11 = vld [vmem:[%s1867_s7 + $0x10] sm:$0xff]  ;;  %v697_v12 = vld [vmem:[%s1867_s7 + $0x28] sm:$0xff]  ;;  %v700_v13 = vld [vmem:[%s1867_s7 + $0x40] sm:$0xff] }
 0x11e   : > { %v703_v14 = vld [vmem:[%s1867_s7 + $0x58] sm:$0xff] }
 0x11f   : > { %vm565_vm1 = vcmp.ge.f32.partialorder %v564_v15, 0.0  ;;  %v566_v17 = vmul.f32 0.01, %v564_v15  ;;  %vm551_vm2 = vcmp.ge.f32.partialorder %v550_v16, 0.0  ;;  %v552_v18 = vmul.f32 0.01, %v550_v16 }
 0x120   : > { %v559_v22 = vmul.f32 0.01, %v557_v19  ;;  %vm558_vm3 = vcmp.ge.f32.partialorder %v557_v19, 0.0  ;;  %v544_v26 = vmul.f32 0.01, %v542_v25  ;;  %vm543_vm4 = vcmp.ge.f32.partialorder %v542_v25, 0.0 }
 0x121   : > { %v567_v20 = vsel %vm565_vm1, %v564_v15, %v566_v17  ;;  %v553_v21 = vsel %vm551_vm2, %v550_v16, %v552_v18  ;;  %v692_v15 = vld [vmem:[%s1867_s7] sm:$0xff]  ;;  %v706_v16 = vld [vmem:[%s1867_s7 + $0x70] sm:$0xff]  ;;  %v695_v17 = vld [vmem:[%s1867_s7 + $0x18] sm:$0xff] }
 0x122   : > { %579 = vrot.lane.b32.xlu0 %v567_v20, %s1445_s26  ;;  %569 = vrot.lane.b32.xlu2 %v553_v21, %s1446_s15  ;;  %v560_v23 = vsel %vm558_vm3, %v557_v19, %v559_v22  ;;  %v545_v27 = vsel %vm543_vm4, %v542_v25, %v544_v26  ;;  %v698_v18 = vld [vmem:[%s1867_s7 + $0x30] sm:$0xff]  ;;  %v701_v19 = vld [vmem:[%s1867_s7 + $0x48] sm:$0xff] }
 0x123   : > { %v707_v22 = vld [vmem:[%s1867_s7 + $0x78] sm:$0xff]  ;;  %v696_v25 = vld [vmem:[%s1867_s7 + $0x20] sm:$0xff] }
 0x12a   : > { %574 = vrot.lane.b32.xlu2 %v560_v23, %s1447_s16 }
 0x17c   : > { %v570_v24 = vpop.permute.xlu2 %569 }
 0x17d   : > { %v572_v29 = vmax.f32 %v545_v27, %v570_v24 }
 0x184   : > { %v575_v28 = vpop.permute.xlu2 %574 }
 0x185   : > { %v577_v30 = vmax.f32 %v572_v29, %v575_v28 }
 0x194   : > { %v580_v31 = vpop.permute.xlu0 %579 }
 0x195   : > { %v582_v32 = vmax.f32 %v577_v30, %v580_v31 }
 0x197   : > { %599 = vrot.lane.b32.xlu0 %v582_v32, %s1444_s13  ;;  %593 = vrot.lane.b32.xlu2 %v582_v32, %s1442_s1  ;;  %v583_v33 = vsub.f32 %v545_v27, %v582_v32 }
 0x198   : > { %587 = vrot.lane.b32.xlu1 %v582_v32, %s1443_s17  ;;  %v699_v32 = vld [vmem:[%s1867_s7 + $0x38] sm:$0xff] }
 0x199   : > { %v584_v46 = vmul.f32 1.442695, %v583_v33 }
 0x1f1   : > { %v594_v34 = vpop.permute.xlu2 %593 }
 0x1f2   : > { %v596_v35 = vsub.f32 %v560_v23, %v594_v34 }
 0x1f4   : > { %v597_v36 = vmul.f32 1.442695, %v596_v35 }
 0x1f6   : > { %1317 = vpow2.f32 %v597_v36 }
 0x1fc   : > { %v1318_v37 = vpop.eup %1317 }
 0x1fd   : > { %611 = vrot.lane.b32.xlu2 %v1318_v37, %s1447_s16 }
 0x209   : > { %v600_v38 = vpop.permute.xlu0 %599 }
 0x20a   : > { %v602_v39 = vsub.f32 %v567_v20, %v600_v38  ;;  %v588_v40 = vpop.permute.xlu1 %587  ;;  %v704_v20 = vld [vmem:[%s1867_s7 + $0x60] sm:$0xff] }
 0x20b   : > { %v590_v41 = vsub.f32 %v553_v21, %v588_v40  ;;  %v693_v21 = vld [vmem:[%s1867_s7 + $0x8] sm:$0xff]  ;;  %v680_v38 = vld [vmem:[%s1866_s6 + $0x20] sm:$0xff]  ;;  %v687_v40 = vld [vmem:[%s1866_s6 + $0x58] sm:$0xff] }
 0x20c   : > { %v603_v42 = vmul.f32 1.442695, %v602_v39  ;;  %v684_v39 = vld [vmem:[%s1866_s6 + $0x40] sm:$0xff] }
 0x20d   : > { %v591_v43 = vmul.f32 1.442695, %v590_v41  ;;  %v705_v41 = vld [vmem:[%s1867_s7 + $0x68] sm:$0xff] }
 0x20e   : > { %1319 = vpow2.f32 %v603_v42  ;;  %v677_v42 = vld [vmem:[%s1866_s6 + $0x8] sm:$0xff] }
 0x20f   : > { %1321 = vpow2.f32 %v591_v43  ;;  %v681_v43 = vld [vmem:[%s1866_s6 + $0x28] sm:$0xff] }
 0x210   : > { %1323 = vpow2.f32 %v584_v46  ;;  %v678_v46 = vld [vmem:[%s1866_s6 + $0x10] sm:$0xff] }
 0x214   : > { %v1320_v44 = vpop.eup %1319 }
 0x215   : > { %v1322_v45 = vpop.eup %1321  ;;  %616 = vrot.lane.b32.xlu0 %v1320_v44, %s1445_s26 }
 0x216   : > { %606 = vrot.lane.b32.xlu1 %v1322_v45, %s1446_s15  ;;  %v1324_v47 = vpop.eup %1323 }
 0x257   : > { %v612_v50 = vpop.permute.xlu2 %611 }
 0x287   : > { %v617_v52 = vpop.permute.xlu0 %616 }
 0x288   : > { %v607_v48 = vpop.permute.xlu1 %606 }
 0x289   : > { %v609_v49 = vadd.f32 %v1324_v47, %v607_v48  ;;  %v686_v48 = vld [vmem:[%s1866_s6 + $0x50] sm:$0xff] }
 0x28b   : > { %v614_v51 = vadd.f32 %v612_v50, %v609_v49  ;;  %v689_v49 = vld [vmem:[%s1866_s6 + $0x68] sm:$0xff]  ;;  %v679_v50 = vld [vmem:[%s1866_s6 + $0x18] sm:$0xff] }
 0x28d   : > { %v619_v53 = vadd.f32 %v617_v52, %v614_v51  ;;  %v683_v51 = vld [vmem:[%s1866_s6 + $0x38] sm:$0xff]  ;;  %v690_v52 = vld [vmem:[%s1866_s6 + $0x70] sm:$0xff] }
 0x28f   : > { %1325 = vrcp.f32 %v619_v53  ;;  %v631_v57 = vand.u32 2147483648, %v619_v53  ;;  %v629_v59 = vand.u32 2147483647, %v619_v53  ;;  %vm625_vm6 = vweird.f32 %v619_v53 }
 0x291   : > { %v632_v61 = vor.u32 1.1754944e-38, %v631_v57  ;;  %vm630_vm8 = vcmp.eq.f32.partialorder %v629_v59, 8.507059e+37 }
 0x295   : > { %v1326_v54 = vpop.eup %1325 }
 0x296   : > { %v621_v55 = vmul.f32 %v1326_v54, %v619_v53  ;;  %vm626_vm5 = vweird.f32 %v1326_v54  ;;  %v691_v53 = vld [vmem:[%s1866_s6 + $0x78] sm:$0xff] }
 0x297   : > { %vm627_vm7 = vmor %vm625_vm6, %vm626_vm5 }
 0x298   : > { %v622_v56 = vsub.f32 1.0, %v621_v55 }
 0x29a   : > { %v623_v58 = vmul.f32 %v1326_v54, %v622_v56 }
 0x29c   : > { %v624_v60 = vadd.f32 %v1326_v54, %v623_v58 }
 0x29e   : > { %v628_v62 = vsel %vm627_vm7, %v1326_v54, %v624_v60 }
 0x29f   : > { %v633_v63 = vsel %vm630_vm8, %v632_v61, %v628_v62  ;;  %v917_v61 = vlaneseq }
 0x2a0   : > { %658 = vrot.lane.b32.xlu0 %v633_v63, %s1444_s13  ;;  %648 = vrot.lane.b32.xlu2 %v633_v63, %s1442_s1  ;;  %v635_v0 = vmul.f32 %v1324_v47, %v633_v63  ;;  %v682_v47 = vld [vmem:[%s1866_s6 + $0x30] sm:$0xff] }
 0x2a1   : > { %638 = vrot.lane.b32.xlu1 %v633_v63, %s1443_s17  ;;  %s1381_s17 = scalar_lea.hbm %s1868_s8, 16 }
 0x2a2   : > { %v636_v23 = vmul.f32 %v635_v0, %v1578_v8 }
 0x2fa   : > { %v649_v1 = vpop.permute.xlu2 %648 }
 0x2fb   : > { %v651_v2 = vmul.f32 %v1318_v37, %v649_v1  ;;  %v676_v37 = vld [vmem:[%s1866_s6] sm:$0xff] }
 0x2fd   : > { %v652_v3 = vmul.f32 %v651_v2, %v1578_v8 }
 0x2ff   : > { %654 = vrot.lane.b32.xlu2 %v652_v3, %s1447_s16  ;;  %v1729_v3 = vand.u32 127, %v917_v61 }
 0x301   : > { %vm922_vm11 = vcmp.lt.s32.totalorder %v1729_v3, 16 }
 0x307   : > { %715 = vperm.xlu2 %1316, %v693_v21  }
 0x30f   : > { %730 = vperm.xlu2 %1316, %v696_v25  }
 0x312   : > { %v659_v4 = vpop.permute.xlu0 %658 }
 0x313   : > { %v661_v5 = vmul.f32 %v1320_v44, %v659_v4  ;;  %v639_v6 = vpop.permute.xlu1 %638  ;;  %v685_v44 = vld [vmem:[%s1866_s6 + $0x48] sm:$0xff] }
 0x314   : > { %v641_v7 = vmul.f32 %v1322_v45, %v639_v6  ;;  %v688_v45 = vld [vmem:[%s1866_s6 + $0x60] sm:$0xff] }
 0x315   : > { %v662_v9 = vmul.f32 %v661_v5, %v1578_v8 }
 0x316   : > { %v642_v10 = vmul.f32 %v641_v7, %v1578_v8  ;;  %v702_v8 = vld [vmem:[%s1867_s7 + $0x50] sm:$0xff] }
 0x317   : > { %664 = vrot.lane.b32.xlu0 %v662_v9, %s1445_s26  ;;  %745 = vperm.xlu2 %1316, %v699_v32   ;;  %s1245_s26 = sshll.u32 %s1431_s12, 3  ;;  %s1007_s12 = scalar_lea.sflag [#allocation3], %s411_s23 }
 0x318   : > { %644 = vrot.lane.b32.xlu1 %v642_v10, %s1446_s15  ;;  %s1027_s18 = scalar_lea.hbm %s1868_s8, %s1245_s26 }
 0x319   : > { %s1031_s28 = sshll.u32 %s1027_s18, 4  ;;  %s1032_s28 = int_to_ptr.hbm [resolvable:$true] %s1031_s28 }
 0x31a   : > { %s1375_s29 = sshra.s32 %s1032_s28, 4  ;;  %s1376_s29 = int_to_ptr.hbm [resolvable:$true] %s1375_s29 }
 0x31b   : > { %s1377_s1 = scalar_lea.hbm %s1376_s29, 8  ;;  %p1382_p1 = scmp.lt.s32.totalorder %s1376_s29, %s1868_s8 }
 0x31c   : > { %p1378_p12 = scmp.ne.s32.totalorder %s1376_s29, %s1377_s1  ;;  %p1383_p2 = scmp.lt.s32.totalorder %s1381_s17, %s1377_s1 }
 0x31e   : > { %p1379_p13 = pnand %p1378_p12, %p1538_p4  ;;  %p1384_p3 = por %p1383_p2, %p1382_p1 }
 0x31f   : > { %720 = vperm.xlu0 %1314, %v694_v11   ;;  %760 = vperm.xlu2 %1316, %v702_v8  }
 0x320   : > { %710 = vperm.xlu1 %1315, %v692_v15   ;;  %p1380_p0 = pneg %p1379_p13 }
 0x322   : > { %p1385_p5 = pnand %p1384_p3, %p1380_p0 }
 0x327   : > { %735 = vperm.xlu0 %1314, %v697_v12   ;;  %775 = vperm.xlu2 %1316, %v705_v41  }
 0x328   : > { %725 = vperm.xlu1 %1315, %v695_v17  }
 0x32f   : > { %750 = vperm.xlu0 %1314, %v700_v13  }
 0x330   : > { %740 = vperm.xlu1 %1315, %v698_v18  }
 0x337   : > { %765 = vperm.xlu0 %1314, %v703_v14  }
 0x338   : > { %755 = vperm.xlu1 %1315, %v701_v19  }
 0x33f   : > { %780 = vperm.xlu0 %1314, %v706_v16  }
 0x340   : > { %770 = vperm.xlu1 %1315, %v704_v20  }
 0x348   : > { %785 = vperm.xlu1 %1315, %v707_v22  }
 0x359   : > { %v655_v27 = vpop.permute.xlu2 %654 }
 0x361   : > { %v716_v58 = vpop.permute.xlu2 %715 }
 0x369   : > { %v731_v1 = vpop.permute.xlu2 %730 }
 0x371   : > { %v746_v15 = vpop.permute.xlu2 %745 }
 0x389   : > { %v665_v29 = vpop.permute.xlu0 %664 }
 0x38a   : > { %v645_v24 = vpop.permute.xlu1 %644 }
 0x38b   : > { %v647_v26 = vadd.f32 %v645_v24, %v636_v23 }
 0x38d   : > { %v657_v28 = vadd.f32 %v655_v27, %v647_v26 }
 0x38f   : > { %v667_v30 = vadd.f32 %v665_v29, %v657_v28 }
 0x391   : > { %v669_v31 = vmin.f32 %v667_v30, 0.0  ;;  %vm668_vm10 = vcmp.gt.f32.partialorder %v667_v30, 0.0  ;;  %v721_v55 = vpop.permute.xlu0 %720 }
 0x392   : > { %v711_v54 = vpop.permute.xlu1 %710 }
 0x393   : > { %v670_v33 = vmul.f32 1.442695, %v669_v31  ;;  %v761_v31 = vpop.permute.xlu2 %760 }
 0x395   : > { %1327 = vpow2.f32 %v670_v33 }
 0x399   : > { %v736_v57 = vpop.permute.xlu0 %735 }
 0x39a   : > { %v1725_v56 = vpop.permute.xlu1 %725 }
 0x39b   : > { %v1328_v34 = vpop.eup %1327 }
 0x39c   : > { %v1227_v35 = vadd.f32 -1.0, %v1328_v34 }
 0x39e   : > { %v673_v36 = vsel %vm668_vm10, %v667_v30, %v1227_v35 }
 0x39f   : > { %851 = vmatpush.msrb.mxu0 %v673_v36  ;;  %1249 = vmatpush.msrb.mxu1 %v673_v36  ;;  %675 = vst.msk [vmem:[%s413_s20] sm:$0xff] %vm674_vm9, %v673_v36 }
 0x3a0   : > { %1250 = vmatpush.msrb.mxu2 %v673_v36  ;;  %1251 = vmatpush.msra.mxu3 %v673_v36 }
 0x3a1   : > { %1228 = vmatmul.msk.f32.vlgmr.msrb.gmra.mxu0 %vm469_vm0, %v676_v37  ;;  %1232 = vmatmul.msk.f32.vlgmr.msrb.gmra.mxu1 %vm469_vm0, %v680_v38  ;;  %v751_v60 = vpop.permute.xlu0 %750 }
 0x3a2   : > { %1236 = vmatmul.msk.f32.vlgmr.msrb.gmra.mxu2 %vm469_vm0, %v684_v39  ;;  %1239 = vmatmul.msk.f32.vlgmr.msra.gmra.mxu3 %vm469_vm0, %v687_v40  ;;  %v1727_v59 = vpop.permute.xlu1 %740 }
 0x3a9   : > { %1229 = vmatmul.msk.f32.gmra.mxu0 %vm469_vm0, %v677_v42  ;;  %1233 = vmatmul.msk.f32.gmra.mxu1 %vm469_vm0, %v681_v43  ;;  %v766_v11 = vpop.permute.xlu0 %765 }
 0x3aa   : > { %1237 = vmatmul.msk.f32.gmra.mxu2 %vm469_vm0, %v685_v44  ;;  %1240 = vmatmul.msk.f32.gmra.mxu3 %vm469_vm0, %v688_v45  ;;  %v756_v4 = vpop.permute.xlu1 %755 }
 0x3b1   : > { %1230 = vmatmul.msk.f32.gmra.mxu0 %vm469_vm0, %v678_v46  ;;  %1234 = vmatmul.msk.f32.gmra.mxu1 %vm469_vm0, %v682_v47 }
 0x3b2   : > { %1238 = vmatmul.msk.f32.gmra.mxu2 %vm469_vm0, %v686_v48  ;;  %1241 = vmatmul.msk.f32.gmra.mxu3 %vm469_vm0, %v689_v49  ;;  %v771_v24 = vpop.permute.xlu1 %770 }
 0x3b9   : > { %1231 = vmatmul.msk.f32.gmra.mxu0 %vm469_vm0, %v679_v50  ;;  %1235 = vmatmul.msk.f32.gmra.mxu1 %vm469_vm0, %v683_v51  ;;  %v781_v51 = vpop.permute.xlu0 %780 }
 0x3ba   : > { %1242 = vmatmul.msk.f32.gmra.mxu3 %vm469_vm0, %v690_v52 }
 0x3c2   : > { %1243 = vmatmul.msk.f32.gmra.mxu3 %vm469_vm0, %v691_v53 }
 0x41e   : > { %v853_v62 = vpop.f32.mrf.mxu0  ;;  %v865_v63 = vpop.f32.mrf.mxu1 }
 0x41f   : > { %v854_v0 = vadd.f32 %v853_v62, %v711_v54  ;;  %v866_v2 = vadd.f32 %v865_v63, %v731_v1 }
 0x421   : > { %1329 = vtanh.f32 %v854_v0 }
 0x422   : > { %1331 = vtanh.f32 %v866_v2  ;;  %v786_v2 = vpop.permute.xlu1 %785 }
 0x425   : > { %v877_v5 = vpop.f32.mrf.mxu2  ;;  %v886_v6 = vpop.f32.mrf.mxu3 }
 0x426   : > { %v878_v7 = vadd.f32 %v877_v5, %v751_v60  ;;  %v856_v9 = vpop.f32.mrf.mxu0  ;;  %v887_v12 = vadd.f32 %v886_v6, %v766_v11  ;;  %v868_v16 = vpop.f32.mrf.mxu1 }
 0x427   : > { %v1330_v10 = vpop.eup %1329  ;;  %v857_v25 = vadd.f32 %v856_v9, %v716_v58  ;;  %v869_v38 = vadd.f32 %v868_v16, %v736_v57 }
 0x428   : > { %1333 = vtanh.f32 %v878_v7  ;;  %v925_v13 = vsel %vm922_vm11, %v1330_v10, 0.0  ;;  %v1332_v17 = vpop.eup %1331 }
 0x429   : > { %v941_v14 = vsel %vm674_vm9, %v925_v13, 0.0  ;;  %1335 = vtanh.f32 %v887_v12  ;;  %v929_v23 = vsel %vm922_vm11, %v1332_v17, 0.0 }
 0x42a   : > { %942 = vadd.xlane.f32.xlu2 %v941_v14  ;;  %v953_v29 = vsel %vm674_vm9, %v929_v23, 0.0 }
 0x42d   : > { %v880_v18 = vpop.f32.mrf.mxu2  ;;  %v889_v19 = vpop.f32.mrf.mxu3 }
 0x42e   : > { %v1334_v20 = vpop.eup %1333  ;;  %v881_v21 = vadd.f32 %v880_v18, %v756_v4  ;;  %v859_v22 = vpop.f32.mrf.mxu0  ;;  %v890_v27 = vadd.f32 %v889_v19, %v771_v24 }
 0x42f   : > { %v933_v26 = vsel %vm922_vm11, %v1334_v20, 0.0  ;;  %v1336_v30 = vpop.eup %1335  ;;  %v871_v32 = vpop.f32.mrf.mxu1  ;;  %v860_v40 = vadd.f32 %v859_v22, %v721_v55 }
 0x430   : > { %1337 = vtanh.f32 %v881_v21  ;;  %v965_v28 = vsel %vm674_vm9, %v933_v26, 0.0  ;;  %v936_v34 = vsel %vm922_vm11, %v1336_v30, 0.0  ;;  %v872_v52 = vadd.f32 %v871_v32, %v1727_v59  ;;  %v776_v4 = vpop.permute.xlu2 %775 }
 0x431   : > { %966 = vadd.xlane.f32.xlu0 %v965_v28  ;;  %1339 = vtanh.f32 %v857_v25  ;;  %v974_v42 = vsel %vm674_vm9, %v936_v34, 0.0 }
 0x432   : > { %954 = vadd.xlane.f32.xlu2 %v953_v29  ;;  %1341 = vtanh.f32 %v890_v27 }
 0x435   : > { %v883_v33 = vpop.f32.mrf.mxu2  ;;  %v892_v8 = vpop.f32.mrf.mxu3 }
 0x436   : > { %v1338_v35 = vpop.eup %1337  ;;  %v884_v36 = vadd.f32 %v883_v33, %v761_v31  ;;  %v862_v37 = vpop.f32.mrf.mxu0  ;;  %v893_v10 = vadd.f32 %v892_v8, %v776_v4 }
 0x437   : > { %v934_v39 = vsel %vm922_vm11, %v1338_v35, 0.0  ;;  %v1340_v43 = vpop.eup %1339  ;;  %v863_v44 = vadd.f32 %v862_v37, %v1725_v56  ;;  %v874_v50 = vpop.f32.mrf.mxu1 }
 0x438   : > { %1343 = vtanh.f32 %v884_v36  ;;  %v968_v41 = vsel %vm674_vm9, %v934_v39, 0.0  ;;  %v1342_v45 = vpop.eup %1341  ;;  %v926_v48 = vsel %vm922_vm11, %v1340_v43, 0.0  ;;  %v875_v60 = vadd.f32 %v874_v50, %v746_v15 }
 0x439   : > { %969 = vadd.xlane.f32.xlu1 %v968_v41  ;;  %975 = vadd.xlane.f32.xlu0 %v974_v42  ;;  %1345 = vtanh.f32 %v869_v38  ;;  %v937_v47 = vsel %vm922_vm11, %v1342_v45, 0.0  ;;  %v944_v56 = vsel %vm674_vm9, %v926_v48, 0.0 }
 0x43a   : > { %1347 = vtanh.f32 %v860_v40  ;;  %v977_v55 = vsel %vm674_vm9, %v937_v47, 0.0 }
 0x43b   : > { %1349 = vtanh.f32 %v863_v44 }
 0x43c   : > { %1351 = vtanh.f32 %v872_v52 }
 0x43d   : > { %v895_v46 = vpop.f32.mrf.mxu3 }
 0x43e   : > { %v1344_v49 = vpop.eup %1343  ;;  %v896_v54 = vadd.f32 %v895_v46, %v781_v51 }
 0x43f   : > { %v935_v53 = vsel %vm922_vm11, %v1344_v49, 0.0  ;;  %v1346_v58 = vpop.eup %1345 }
 0x440   : > { %v971_v57 = vsel %vm674_vm9, %v935_v53, 0.0  ;;  %v1348_v61 = vpop.eup %1347  ;;  %1353 = vtanh.f32 %v896_v54  ;;  %v930_v0 = vsel %vm922_vm11, %v1346_v58, 0.0 }
 0x441   : > { %978 = vadd.xlane.f32.xlu1 %v977_v55  ;;  %945 = vadd.xlane.f32.xlu0 %v944_v56  ;;  %v1350_v62 = vpop.eup %1349  ;;  %1355 = vtanh.f32 %v875_v60  ;;  %v927_v63 = vsel %vm922_vm11, %v1348_v61, 0.0  ;;  %v956_v7 = vsel %vm674_vm9, %v930_v0, 0.0 }
 0x442   : > { %972 = vadd.xlane.f32.xlu2 %v971_v57  ;;  %v928_v1 = vsel %vm922_vm11, %v1350_v62, 0.0  ;;  %v947_v6 = vsel %vm674_vm9, %v927_v63, 0.0  ;;  %v1352_v9 = vpop.eup %1351 }
 0x443   : > { %v950_v11 = vsel %vm674_vm9, %v928_v1, 0.0  ;;  %v931_v14 = vsel %vm922_vm11, %v1352_v9, 0.0 }
 0x444   : > { %v959_v17 = vsel %vm674_vm9, %v931_v14, 0.0 }
 0x445   : > { %v898_v59 = vpop.f32.mrf.mxu3 }
 0x446   : > { %v899_v5 = vadd.f32 %v898_v59, %v786_v2  ;;  %v1354_v12 = vpop.eup %1353 }
 0x447   : > { %v1356_v13 = vpop.eup %1355  ;;  %v939_v15 = vsel %vm922_vm11, %v1354_v12, 0.0 }
 0x448   : > { %1357 = vtanh.f32 %v899_v5  ;;  %v932_v16 = vsel %vm922_vm11, %v1356_v13, 0.0  ;;  %v983_v18 = vsel %vm674_vm9, %v939_v15, 0.0 }
 0x449   : > { %948 = vadd.xlane.f32.xlu1 %v947_v6  ;;  %957 = vadd.xlane.f32.xlu0 %v956_v7  ;;  %1359 = vtanh.f32 %v893_v10 }
 0x44a   : > { %951 = vadd.xlane.f32.xlu2 %v950_v11 }
 0x44b   : > { %1388 = shalt.err (!%p1385_p5)
}
 0x44c   : > { %1252 = dma.vmem_to_hbm [thread:$0]  (%p1538_p4), %s1030_s27, 128, %s1032_s28, %s1007_s12   ;;  %v962_v19 = vsel %vm674_vm9, %v932_v16, 0.0  ;;  %vm989_vm12 = vcmask 7168  }
 0x44d   : > { %s1248_s19 = sshll.u32 %s1558_s25, 7 }
 0x44e   : > { %v1358_v20 = vpop.eup %1357  ;;  %s1804_s16 = scalar_lea.vmem %s1869_s9, %s1248_s19 }
 0x44f   : > { %v1360_v21 = vpop.eup %1359  ;;  %v940_v22 = vsel %vm922_vm11, %v1358_v20, 0.0 }
 0x450   : > { %v938_v23 = vsel %vm922_vm11, %v1360_v21, 0.0  ;;  %v986_v24 = vsel %vm674_vm9, %v940_v22, 0.0 }
 0x451   : > { %960 = vadd.xlane.f32.xlu1 %v959_v17  ;;  %984 = vadd.xlane.f32.xlu0 %v983_v18  ;;  %v980_v25 = vsel %vm674_vm9, %v938_v23, 0.0 }
 0x452   : > { %963 = vadd.xlane.f32.xlu2 %v962_v19 }
 0x459   : > { %987 = vadd.xlane.f32.xlu1 %v986_v24 }
 0x45a   : > { %981 = vadd.xlane.f32.xlu2 %v980_v25 }
 0x49d   : > { %v943_v3 = vpop.xlane.xlu2 %942 }
 0x49e   : > { %990 = vst.msk [vmem:[%s1804_s16] sm:$0xff] %vm989_vm12, %v943_v3 }
 0x4a4   : > { %v967_v26 = vpop.xlane.xlu0 %966 }
 0x4a5   : > { %998 = vst.msk [vmem:[%s1804_s16 + $0x40] sm:$0xff] %vm989_vm12, %v967_v26  ;;  %v955_v27 = vpop.xlane.xlu2 %954 }
 0x4a6   : > { %994 = vst.msk [vmem:[%s1804_s16 + $0x20] sm:$0xff] %vm989_vm12, %v955_v27 }
 0x4ac   : > { %v970_v28 = vpop.xlane.xlu1 %969  ;;  %v976_v29 = vpop.xlane.xlu0 %975 }
 0x4ad   : > { %999 = vst.msk [vmem:[%s1804_s16 + $0x48] sm:$0xff] %vm989_vm12, %v970_v28 }
 0x4ae   : > { %1001 = vst.msk [vmem:[%s1804_s16 + $0x58] sm:$0xff] %vm989_vm12, %v976_v29 }
 0x4b4   : > { %v979_v30 = vpop.xlane.xlu1 %978  ;;  %v946_v31 = vpop.xlane.xlu0 %945 }
 0x4b5   : > { %1002 = vst.msk [vmem:[%s1804_s16 + $0x60] sm:$0xff] %vm989_vm12, %v979_v30  ;;  %v973_v32 = vpop.xlane.xlu2 %972 }
 0x4b6   : > { %991 = vst.msk [vmem:[%s1804_s16 + $0x8] sm:$0xff] %vm989_vm12, %v946_v31 }
 0x4b7   : > { %1000 = vst.msk [vmem:[%s1804_s16 + $0x50] sm:$0xff] %vm989_vm12, %v973_v32 }
 0x4bc   : > { %v949_v33 = vpop.xlane.xlu1 %948  ;;  %v958_v8 = vpop.xlane.xlu0 %957 }
 0x4bd   : > { %992 = vst.msk [vmem:[%s1804_s16 + $0x10] sm:$0xff] %vm989_vm12, %v949_v33  ;;  %v952_v34 = vpop.xlane.xlu2 %951 }
 0x4be   : > { %995 = vst.msk [vmem:[%s1804_s16 + $0x28] sm:$0xff] %vm989_vm12, %v958_v8 }
 0x4bf   : > { %993 = vst.msk [vmem:[%s1804_s16 + $0x18] sm:$0xff] %vm989_vm12, %v952_v34 }
 0x4c4   : > { %v961_v35 = vpop.xlane.xlu1 %960  ;;  %v985_v36 = vpop.xlane.xlu0 %984 }
 0x4c5   : > { %996 = vst.msk [vmem:[%s1804_s16 + $0x30] sm:$0xff] %vm989_vm12, %v961_v35  ;;  %v964_v37 = vpop.xlane.xlu2 %963 }
 0x4c6   : > { %1004 = vst.msk [vmem:[%s1804_s16 + $0x70] sm:$0xff] %vm989_vm12, %v985_v36 }
 0x4c7   : > { %997 = vst.msk [vmem:[%s1804_s16 + $0x38] sm:$0xff] %vm989_vm12, %v964_v37 }
 0x4cc   : > { %v988_v38 = vpop.xlane.xlu1 %987 }
 0x4cd   : > { %1005 = vst.msk [vmem:[%s1804_s16 + $0x78] sm:$0xff] %vm989_vm12, %v988_v38  ;;  %v982_v39 = vpop.xlane.xlu2 %981 }
 0x4ce   : > { %1003 = vst.msk [vmem:[%s1804_s16 + $0x68] sm:$0xff] %vm989_vm12, %v982_v39 }
 0x4cf PF: > { %p1258_p4 = scmp.ge.s32.totalorder %s1439_s14, 2  ;;  %s1046_s25 = sand.u32 1, %s1419_s30  }
 0x4d0   : > { %s1047_s18 = scalar_lea.sflag [#allocation3], %s1046_s25 }
 0x4d1   : > { %p1255_p6 = pnand %p1258_p4, %p1545_p8 }
 0x4d3   : > { %p1256_p7 = pneg %p1255_p6 }
 0x4d5   : > { %1414 = dma.done.wait (%p1256_p7), %s1047_s18, 128  }
 0x4d6   : > { %1416 = vsyncadd (%p1256_p7), %s1047_s18, 4294967168  ;;  %s23_s14 = sadd.s32 1, %s1439_s14   ;;  %s1878_s12 = sld [smem:[#allocation5_spill]] }
 0x4d7   : > { %p20_p9 = scmp.ge.s32.totalorder %s23_s14, 4   ;;  %s1879_s13 = sld [smem:[#allocation6_spill]] }
 0x4d8   : > { %s1880_s30 = smov %s1423_s10  ;;  %s1881_s10 = smov %s1427_s11 }
 0x4d9   : > { %s1882_s11 = smov %s1551_s22  ;;  %22 = sbr.rel (!%p20_p9) target bundleno = 6 (0x6), region = 114 }
 0x4de   :  { %1065 = vsyncpa [#allocation3], 1 }
 0x4df   :  { %1067 = vsyncpa [#allocation3 + $0x1], 1 }

</bundles_post_ra>
